<compile_context>
chip_gen: v7x
topology: tpu7x:2x2x1
jax: 0.10.0
libtpu: 0.0.40
codegen_flags: <defaults>
</compile_context>

<pallas_src>
import jax
import jax.numpy as jnp
from jax.experimental import pallas as pl
from jax.experimental.pallas import tpu as pltpu

HIDDEN = 128      # hidden_dim default of mlp_net
HEAD_LANES = 128  # padded head width -> lane-dense output stores


def _mlp_net_kernel(x_ref, w1_ref, w2_ref, wh_ref, consts_ref, head_ref, sigma_ref):
    hw = head_ref.shape[1]  # = HEAD_LANES (static)

    # fc1_v | fc1_a fused along output lanes: (TB, 2H)
    x = x_ref[...].astype(jnp.bfloat16)
    h1 = jnp.dot(x, w1_ref[...], preferred_element_type=jnp.float32)
    h1 = jnp.tanh(h1 + consts_ref[0:1, :])

    # fc2_v / fc2_a as one block-diagonal matmul: (TB, 2H)
    h2 = jnp.dot(h1.astype(jnp.bfloat16), w2_ref[...],
                 preferred_element_type=jnp.float32)
    h2 = jnp.tanh(h2 + consts_ref[1:2, :])

    # fused heads, padded to 128 lanes: col 0 = state_value, cols 1:1+A = mean
    head = jnp.dot(h2.astype(jnp.bfloat16), wh_ref[...],
                   preferred_element_type=jnp.float32)
    head_ref[...] = (head + consts_ref[2:3, 0:hw]).astype(head_ref.dtype)

    # sigma = exp(sigma_log), broadcast over the batch tile (padding cols -> 1.0)
    sigma = jnp.exp(consts_ref[3:4, 0:hw])
    sigma_ref[...] = jnp.broadcast_to(sigma, sigma_ref.shape).astype(sigma_ref.dtype)


def mlp_net_forward(x, packed, num_actions, *, block_b=512):
    """Runs the mlp_net forward pass; returns (state_value, (mean, sigma))."""
    w1, w2, wh, consts = packed
    B, D = x.shape
    assert wh.shape[1] == HEAD_LANES

    # Pad batch to a multiple of 8 (f32 sublane); zero rows are harmless.
    Bp = -(-B // 8) * 8
    if Bp != B:
        x = jnp.concatenate([x, jnp.zeros((Bp - B, D), x.dtype)], axis=0)

    tb = min(block_b, Bp)
    grid = (pl.cdiv(Bp, tb),)

    head, sigma = pl.pallas_call(
        _mlp_net_kernel,
        out_shape=(jax.ShapeDtypeStruct((Bp, HEAD_LANES), jnp.float32),
                   jax.ShapeDtypeStruct((Bp, HEAD_LANES), jnp.float32)),
        grid_spec=pltpu.PrefetchScalarGridSpec(
            num_scalar_prefetch=0,
            grid=grid,
            in_specs=[
                pl.BlockSpec((tb, D), lambda i: (i, 0)),        # x (batch-tiled)
                pl.BlockSpec(w1.shape, lambda i: (0, 0)),       # fused layer-1 W
                pl.BlockSpec(w2.shape, lambda i: (0, 0)),       # block-diag layer-2 W
                pl.BlockSpec(wh.shape, lambda i: (0, 0)),       # fused padded head W
                pl.BlockSpec(consts.shape, lambda i: (0, 0)),   # biases + sigma_log
            ],
            out_specs=[
                pl.BlockSpec((tb, HEAD_LANES), lambda i: (i, 0)),
                pl.BlockSpec((tb, HEAD_LANES), lambda i: (i, 0)),
            ],
        ),
        compiler_params=pltpu.CompilerParams(dimension_semantics=("parallel",)),
    )(x, w1, w2, wh, consts)

    state_value = head[:B, 0:1]
    mean = head[:B, 1:1 + num_actions]
    sigma = sigma[:B, 0:num_actions]
    return state_value, (mean, sigma)


def init_params(key, state_dim, num_actions, hidden=HIDDEN):
    """Deterministic synthetic params; weights stored as (in, out) (transposed vs torch).
    # TODO(synk): the module uses orthogonal_init + zero biases; the init scheme
    # does not affect forward semantics, so random values are used to exercise the math.
    """
    ks = jax.random.split(key, 13)

    def lin(kw, kb, fi, fo):
        w = jax.random.normal(kw, (fi, fo), jnp.float32) / jnp.sqrt(fi)
        b = 0.1 * jax.random.normal(kb, (1, fo), jnp.float32)
        return w, b

    p = {}
    p["w1_v"], p["b1_v"] = lin(ks[0], ks[1], state_dim, hidden)
    p["w2_v"], p["b2_v"] = lin(ks[2], ks[3], hidden, hidden)
    p["w1_a"], p["b1_a"] = lin(ks[4], ks[5], state_dim, hidden)
    p["w2_a"], p["b2_a"] = lin(ks[6], ks[7], hidden, hidden)
    p["w_value"], p["b_value"] = lin(ks[8], ks[9], hidden, 1)
    p["w_mean"], p["b_mean"] = lin(ks[10], ks[11], hidden, num_actions)
    p["sigma_log"] = 0.1 * jax.random.normal(ks[12], (1, num_actions), jnp.float32)
    return p


def pack_params(p, num_actions, hidden=HIDDEN):
    """Packs the per-layer params into 4 fused arrays (weights bf16, consts f32)."""
    assert hidden == HIDDEN
    assert num_actions + 1 <= HEAD_LANES
    H, A = hidden, num_actions
    f32, bf16 = jnp.float32, jnp.bfloat16

    w1 = jnp.concatenate([p["w1_v"], p["w1_a"]], axis=1).astype(bf16)       # (D, 2H)

    z = jnp.zeros((H, H), f32)
    w2 = jnp.block([[p["w2_v"], z], [z, p["w2_a"]]]).astype(bf16)           # (2H, 2H)

    wh = jnp.zeros((2 * H, HEAD_LANES), f32)
    wh = wh.at[:H, 0:1].set(p["w_value"])
    wh = wh.at[H:, 1:1 + A].set(p["w_mean"])
    wh = wh.astype(bf16)                                                    # (2H, 128)

    b1 = jnp.concatenate([p["b1_v"], p["b1_a"]], axis=1)                    # (1, 2H)
    b2 = jnp.concatenate([p["b2_v"], p["b2_a"]], axis=1)                    # (1, 2H)
    bh = jnp.zeros((1, 2 * H), f32)
    bh = bh.at[:, 0:1].set(p["b_value"])
    bh = bh.at[:, 1:1 + A].set(p["b_mean"])
    sl = jnp.zeros((1, 2 * H), f32).at[:, 0:A].set(p["sigma_log"])
    consts = jnp.concatenate([b1, b2, bh, sl], axis=0)                      # (4, 2H) f32
    return w1, w2, wh, consts


def _reference_forward(x, p, num_actions):
    """Pure-JAX reference with the same precision policy (bf16 operands, f32 accum)."""
    bf = lambda a: a.astype(jnp.bfloat16)
    dot = lambda a, w: jnp.dot(bf(a), bf(w), preferred_element_type=jnp.float32)
    xv = jnp.tanh(dot(x, p["w1_v"]) + p["b1_v"])
    xv = jnp.tanh(dot(xv, p["w2_v"]) + p["b2_v"])
    state_value = dot(xv, p["w_value"]) + p["b_value"]
    xa = jnp.tanh(dot(x, p["w1_a"]) + p["b1_a"])
    xa = jnp.tanh(dot(xa, p["w2_a"]) + p["b2_a"])
    mean = dot(xa, p["w_mean"]) + p["b_mean"]
    sigma = jnp.broadcast_to(jnp.exp(p["sigma_log"]), mean.shape)
    return state_value, (mean, sigma)


if __name__ == "__main__":
    key = jax.random.PRNGKey(0)
    k_x, k_p = jax.random.split(key)

    B, state_dim, num_actions = 8, 32, 8
    x = jax.random.normal(k_x, (B, state_dim), jnp.float32)
    params = init_params(k_p, state_dim, num_actions)
    packed = pack_params(params, num_actions)

    state_value, (mean, sigma) = mlp_net_forward(x, packed, num_actions)
    jax.block_until_ready((state_value, mean, sigma))

    ref_v, (ref_m, ref_s) = _reference_forward(x, params, num_actions)
    assert state_value.shape == (B, 1)
    assert mean.shape == (B, num_actions) and sigma.shape == (B, num_actions)
    assert jnp.allclose(state_value, ref_v, atol=5e-3, rtol=5e-3)
    assert jnp.allclose(mean, ref_m, atol=5e-3, rtol=5e-3)
    assert jnp.allclose(sigma, ref_s, atol=5e-3, rtol=5e-3)

    print("KERNEL_OK")
</pallas_src>

<mosaic_0001>
module attributes {stable_mosaic.version = 11 : i64} {
  func.func @_mlp_net_kernel(%arg0: i32, %arg1: memref<8x32xf32, #tpu.memory_space<vmem>>, %arg2: memref<32x256xbf16, #tpu.memory_space<vmem>>, %arg3: memref<256x256xbf16, #tpu.memory_space<vmem>>, %arg4: memref<256x128xbf16, #tpu.memory_space<vmem>>, %arg5: memref<4x256xf32, #tpu.memory_space<vmem>>, %arg6: memref<8x128xf32, #tpu.memory_space<vmem>>, %arg7: memref<8x128xf32, #tpu.memory_space<vmem>>) attributes {dimension_semantics = [#tpu.dimension_semantics<parallel>], iteration_bounds = array<i64: 1>, scalar_prefetch = 0 : i64, scratch_operands = 0 : i64, tpu.core_type = #tpu.core_type<tc>, window_params = [{transform_indices = @transform_0, window_bounds = array<i64: 8, 32>}, {pipeline_mode = #tpu.pipeline_mode<synchronous>, transform_indices = @transform_1, window_bounds = array<i64: 32, 256>}, {pipeline_mode = #tpu.pipeline_mode<synchronous>, transform_indices = @transform_2, window_bounds = array<i64: 256, 256>}, {pipeline_mode = #tpu.pipeline_mode<synchronous>, transform_indices = @transform_3, window_bounds = array<i64: 256, 128>}, {pipeline_mode = #tpu.pipeline_mode<synchronous>, transform_indices = @transform_4, window_bounds = array<i64: 4, 256>}, {transform_indices = @transform_5, window_bounds = array<i64: 8, 128>}, {transform_indices = @transform_6, window_bounds = array<i64: 8, 128>}]} {
    %c0 = arith.constant 0 : index
    %c0_0 = arith.constant 0 : index
    %0 = vector.load %arg1[%c0, %c0_0] : memref<8x32xf32, #tpu.memory_space<vmem>>, vector<8x32xf32>
    %1 = arith.truncf %0 : vector<8x32xf32> to vector<8x32xbf16>
    %c0_1 = arith.constant 0 : index
    %c0_2 = arith.constant 0 : index
    %2 = vector.load %arg2[%c0_1, %c0_2] : memref<32x256xbf16, #tpu.memory_space<vmem>>, vector<32x256xbf16>
    %cst = arith.constant dense<0.000000e+00> : vector<8x256xf32>
    %3 = tpu.matmul %1, %2, %cst {dimension_numbers = #tpu.dot_dimension_numbers<[1], [0], [0], [1], [0, 0, 1, 1], [], []>} : vector<8x32xbf16>, vector<32x256xbf16>, vector<8x256xf32> -> vector<8x256xf32>
    %c0_3 = arith.constant 0 : index
    %c0_4 = arith.constant 0 : index
    %4 = vector.load %arg5[%c0_3, %c0_4] : memref<4x256xf32, #tpu.memory_space<vmem>>, vector<1x256xf32>
    %5 = vector.broadcast %4 : vector<1x256xf32> to vector<8x256xf32>
    %6 = arith.addf %3, %5 : vector<8x256xf32>
    %7 = math.tanh %6 : vector<8x256xf32>
    %8 = arith.truncf %7 : vector<8x256xf32> to vector<8x256xbf16>
    %c0_5 = arith.constant 0 : index
    %c0_6 = arith.constant 0 : index
    %9 = vector.load %arg3[%c0_5, %c0_6] : memref<256x256xbf16, #tpu.memory_space<vmem>>, vector<256x256xbf16>
    %cst_7 = arith.constant dense<0.000000e+00> : vector<8x256xf32>
    %10 = tpu.matmul %8, %9, %cst_7 {dimension_numbers = #tpu.dot_dimension_numbers<[1], [0], [0], [1], [0, 0, 1, 1], [], []>} : vector<8x256xbf16>, vector<256x256xbf16>, vector<8x256xf32> -> vector<8x256xf32>
    %c1 = arith.constant 1 : index
    %c0_8 = arith.constant 0 : index
    %11 = vector.load %arg5[%c1, %c0_8] : memref<4x256xf32, #tpu.memory_space<vmem>>, vector<1x256xf32>
    %12 = vector.broadcast %11 : vector<1x256xf32> to vector<8x256xf32>
    %13 = arith.addf %10, %12 : vector<8x256xf32>
    %14 = math.tanh %13 : vector<8x256xf32>
    %15 = arith.truncf %14 : vector<8x256xf32> to vector<8x256xbf16>
    %c0_9 = arith.constant 0 : index
    %c0_10 = arith.constant 0 : index
    %16 = vector.load %arg4[%c0_9, %c0_10] : memref<256x128xbf16, #tpu.memory_space<vmem>>, vector<256x128xbf16>
    %cst_11 = arith.constant dense<0.000000e+00> : vector<8x128xf32>
    %17 = tpu.matmul %15, %16, %cst_11 {dimension_numbers = #tpu.dot_dimension_numbers<[1], [0], [0], [1], [0, 0, 1, 1], [], []>} : vector<8x256xbf16>, vector<256x128xbf16>, vector<8x128xf32> -> vector<8x128xf32>
    %c2 = arith.constant 2 : index
    %c0_12 = arith.constant 0 : index
    %18 = vector.load %arg5[%c2, %c0_12] : memref<4x256xf32, #tpu.memory_space<vmem>>, vector<1x128xf32>
    %19 = vector.broadcast %18 : vector<1x128xf32> to vector<8x128xf32>
    %20 = arith.addf %17, %19 : vector<8x128xf32>
    %c0_13 = arith.constant 0 : index
    %c0_14 = arith.constant 0 : index
    %21 = vector.load %arg6[%c0_13, %c0_14] : memref<8x128xf32, #tpu.memory_space<vmem>>, vector<8x128xf32>
    tpu.vector_store %arg6[%c0_13, %c0_14], %20 {strides = array<i32>} : memref<8x128xf32, #tpu.memory_space<vmem>>, vector<8x128xf32>,
    %c3 = arith.constant 3 : index
    %c0_15 = arith.constant 0 : index
    %22 = vector.load %arg5[%c3, %c0_15] : memref<4x256xf32, #tpu.memory_space<vmem>>, vector<1x128xf32>
    %23 = math.exp %22 : vector<1x128xf32>
    %24 = vector.shape_cast %23 : vector<1x128xf32> to vector<1x128xf32>
    %25 = vector.broadcast %24 : vector<1x128xf32> to vector<8x128xf32>
    %c0_16 = arith.constant 0 : index
    %c0_17 = arith.constant 0 : index
    %26 = vector.load %arg7[%c0_16, %c0_17] : memref<8x128xf32, #tpu.memory_space<vmem>>, vector<8x128xf32>
    tpu.vector_store %arg7[%c0_16, %c0_17], %25 {strides = array<i32>} : memref<8x128xf32, #tpu.memory_space<vmem>>, vector<8x128xf32>,
    return
  }
  func.func @transform_0(%arg0: i32) -> (i32, i32) {
    %c0_i32 = arith.constant 0 : i32
    %c0_i32_0 = arith.constant 0 : i32
    return %arg0, %c0_i32 : i32, i32
  }
  func.func @transform_1(%arg0: i32) -> (i32, i32) {
    %c0_i32 = arith.constant 0 : i32
    %c0_i32_0 = arith.constant 0 : i32
    %c0_i32_1 = arith.constant 0 : i32
    return %c0_i32, %c0_i32_0 : i32, i32
  }
  func.func @transform_2(%arg0: i32) -> (i32, i32) {
    %c0_i32 = arith.constant 0 : i32
    %c0_i32_0 = arith.constant 0 : i32
    %c0_i32_1 = arith.constant 0 : i32
    return %c0_i32, %c0_i32_0 : i32, i32
  }
  func.func @transform_3(%arg0: i32) -> (i32, i32) {
    %c0_i32 = arith.constant 0 : i32
    %c0_i32_0 = arith.constant 0 : i32
    %c0_i32_1 = arith.constant 0 : i32
    return %c0_i32, %c0_i32_0 : i32, i32
  }
  func.func @transform_4(%arg0: i32) -> (i32, i32) {
    %c0_i32 = arith.constant 0 : i32
    %c0_i32_0 = arith.constant 0 : i32
    %c0_i32_1 = arith.constant 0 : i32
    return %c0_i32, %c0_i32_0 : i32, i32
  }
  func.func @transform_5(%arg0: i32) -> (i32, i32) {
    %c0_i32 = arith.constant 0 : i32
    %c0_i32_0 = arith.constant 0 : i32
    return %arg0, %c0_i32 : i32, i32
  }
  func.func @transform_6(%arg0: i32) -> (i32, i32) {
    %c0_i32 = arith.constant 0 : i32
    %c0_i32_0 = arith.constant 0 : i32
    return %arg0, %c0_i32 : i32, i32
  }
}

</mosaic_0001>

<bundles_post_ra>
// kernel: tpu_custom_call.1
= control target key start
LH: loop header
LB: loop body
LE: loop exit
PB: predicated region body
PF: predicated region fallthrough
CT: control target
= control target key end

     0   :  { %12 = vsyncpa [#allocation3], 0  ;;  %s1074_s0 = inlined_call_operand.hbm [shape: f32[8,32], index: 0, kind: input, shape index: {}]   ;;  %s1075_s1 = inlined_call_operand.hbm [shape: bf16[32,256], index: 1, kind: input, shape index: {}]   ;;  %s1076_s2 = inlined_call_operand.hbm [shape: bf16[256,256], index: 2, kind: input, shape index: {}]   ;;  %s1077_s3 = inlined_call_operand.hbm [shape: bf16[256,128], index: 3, kind: input, shape index: {}]   ;;  %s1078_s4 = inlined_call_operand.vmem [shape: f32[4,256], index: 4, kind: input, shape index: {}]   ;;  %s1079_s5 = inlined_call_operand.hbm [shape: f32[8,128], index: 5, kind: output, shape index: {0}]   ;;  %s1080_s6 = inlined_call_operand.hbm [shape: f32[8,128], index: 6, kind: output, shape index: {1}]  }
   0x1   :  { %13 = vsyncpa [#allocation6], 0 }
   0x2   :  { %14 = vsyncpa [#allocation9], 0 }
   0x3   :  { %15 = vsyncpa [#allocation4], 0 }
   0x4   :  { %16 = vsyncpa [#allocation12], 0  ;;  %s938_s21 = smov [#allocation5]   ;;  %s796_s25 = scalar_lea.hbm %s1075_s1, 512 }
   0x5   :  { %s32_s22 = sshll.u32 %s938_s21, 4  ;;  %p797_p0 = scmp.ne.s32.totalorder %s1075_s1, %s796_s25  ;;  %s33_s22 = int_to_ptr.vmem [resolvable:$true] %s32_s22 }
   0x6   :  { %p800_p1 = scmp.lt.u32.totalorder %s796_s25, %s1075_s1 }
   0x8   :  { %p802_p2 = pnand %p800_p1, %p797_p0 }
   0xa   :  { %805 = shalt.err (!%p802_p2)
}
   0xb   :  { %s806_s30 = scalar_lea.vmem %s33_s22, 512  ;;  %p811_p4 = scmp.lt.s32.totalorder %s33_s22, %s33_s22 }
   0xc   :  { %p807_p3 = scmp.ne.s32.totalorder %s33_s22, %s806_s30  ;;  %p812_p5 = scmp.lt.s32.totalorder %s806_s30, %s806_s30 }
   0xe   :  { %p813_p6 = por %p812_p5, %p811_p4 }
  0x10   :  { %p814_p7 = pnand %p813_p6, %p807_p3 }
  0x12   :  { %817 = shalt.err (!%p814_p7)
}
  0x13   :  { %s939_s7 = smov 128   ;;  %s940_s8 = smov 8  }
  0x14   :  { %38 = dma.hbm_to_vmem [thread:$0]  %s1075_s1, 512, %s33_s22, [#allocation6], %s939_s7, %s939_s7, %s940_s8  }
  0x15   :  { %s941_s11 = smov [#allocation2]   ;;  %s942_s13 = smov [#allocation7]  }
  0x16   :  { %s23_s12 = sshll.u32 %s941_s11, 4  ;;  %s44_s14 = sshll.u32 %s942_s13, 4  ;;  %s24_s12 = int_to_ptr.vmem [resolvable:$true] %s23_s12  ;;  %s45_s14 = int_to_ptr.vmem [resolvable:$true] %s44_s14 }
  0x17   :  { %s818_s17 = scalar_lea.hbm %s1074_s0, 128 }
  0x18   :  { %p819_p8 = scmp.ne.s32.totalorder %s1074_s0, %s818_s17  ;;  %p822_p9 = scmp.lt.u32.totalorder %s818_s17, %s1074_s0 }
  0x1a   :  { %p824_p10 = pnand %p822_p9, %p819_p8 }
  0x1c   :  { %827 = shalt.err (!%p824_p10)
}
  0x1d   :  { %s828_s1 = scalar_lea.vmem %s24_s12, 128  ;;  %p833_p12 = scmp.lt.s32.totalorder %s24_s12, %s24_s12 }
  0x1e   :  { %p829_p11 = scmp.ne.s32.totalorder %s24_s12, %s828_s1  ;;  %p834_p13 = scmp.lt.s32.totalorder %s828_s1, %s828_s1 }
  0x20   :  { %p835_p0 = por %p834_p13, %p833_p12 }
  0x22   :  { %p836_p1 = pnand %p835_p0, %p829_p11 }
  0x24   :  { %839 = shalt.err (!%p836_p1)
}
  0x25   :  { %26 = dma.hbm_to_vmem [thread:$0]  %s1074_s0, 128, %s24_s12, [#allocation3]  }
  0x26   :  { %s840_s26 = scalar_lea.hbm %s1076_s2, 4096 }
  0x27   :  { %p841_p2 = scmp.ne.s32.totalorder %s1076_s2, %s840_s26  ;;  %p844_p3 = scmp.lt.u32.totalorder %s840_s26, %s1076_s2 }
  0x29   :  { %p846_p4 = pnand %p844_p3, %p841_p2 }
  0x2b   :  { %849 = shalt.err (!%p846_p4)
}
  0x2c   :  { %s850_s9 = scalar_lea.vmem %s45_s14, 4096  ;;  %p855_p6 = scmp.lt.s32.totalorder %s45_s14, %s45_s14 }
  0x2d   :  { %p851_p5 = scmp.ne.s32.totalorder %s45_s14, %s850_s9  ;;  %p856_p7 = scmp.lt.s32.totalorder %s850_s9, %s850_s9 }
  0x2f   :  { %p857_p8 = por %p856_p7, %p855_p6 }
  0x31   :  { %p858_p9 = pnand %p857_p8, %p851_p5 }
  0x33   :  { %861 = shalt.err (!%p858_p9)
}
  0x34   :  { %50 = dma.hbm_to_vmem [thread:$0]  %s1076_s2, 4096, %s45_s14, [#allocation6], %s939_s7, %s939_s7, %s940_s8  }
  0x35   :  { %s943_s11 = smov [#allocation8]   ;;  %s862_s16 = scalar_lea.hbm %s1077_s3, 2048 }
  0x36   :  { %s56_s12 = sshll.u32 %s943_s11, 4  ;;  %p863_p10 = scmp.ne.s32.totalorder %s1077_s3, %s862_s16  ;;  %s57_s12 = int_to_ptr.vmem [resolvable:$true] %s56_s12 }
  0x37   :  { %p866_p11 = scmp.lt.u32.totalorder %s862_s16, %s1077_s3 }
  0x39   :  { %p868_p12 = pnand %p866_p11, %p863_p10 }
  0x3b   :  { %871 = shalt.err (!%p868_p12)
}
  0x3c   :  { %s872_s21 = scalar_lea.vmem %s57_s12, 2048  ;;  %p877_p0 = scmp.lt.s32.totalorder %s57_s12, %s57_s12 }
  0x3d   :  { %p873_p13 = scmp.ne.s32.totalorder %s57_s12, %s872_s21  ;;  %p878_p1 = scmp.lt.s32.totalorder %s872_s21, %s872_s21 }
  0x3f   :  { %p879_p2 = por %p878_p1, %p877_p0 }
  0x41   :  { %p880_p3 = pnand %p879_p2, %p873_p13 }
  0x43   :  { %883 = shalt.err (!%p880_p3)
}
  0x44   :  { %s944_s2 = smov 64   ;;  %s945_s7 = smov 4  }
  0x45   :  { %62 = dma.hbm_to_vmem [thread:$0]  %s1077_s3, 2048, %s57_s12, [#allocation9], %s944_s2, %s944_s2, %s945_s7  }
  0x46   :  { %928 = dma.done.wait [#allocation3], 128  }
  0x47   :  { %929 = vsyncadd [#allocation3], 4294967168 }
  0x48   :  { %930 = dma.done.wait [#allocation6], 4608  }
  0x49   :  { %931 = vsyncadd [#allocation6], 4294962688 }
  0x4a   :  { %932 = dma.done.wait [#allocation9], 2048  }
  0x4b   :  { %933 = vsyncadd [#allocation9], 4294965248  ;;  %v946_v0 = vmov 0   ;;  %v716_v1 = vld [vmem:[#allocation5 + $0x4] ss:$8 sps:$4 sm:$0xff]   ;;  %v78_v5 = vld [vmem:[#allocation2] sm:$0xff]  ;;  %v86_v47 = vlaneseq }
  0x4c   :  { %152 = vmatprep.mubr.bf16.mxu0 %v946_v0  ;;  %v718_v2 = vld [vmem:[#allocation5] ss:$8 sps:$4 sm:$0xff]   ;;  %120 = vmatprep.subr.bf16.mxu0 %v716_v1  ;;  %v719_v3 = vld [vmem:[#allocation5 + $0x14] ss:$8 sps:$4 sm:$0xff]   ;;  %v721_v4 = vld [vmem:[#allocation5 + $0x10] ss:$8 sps:$4 sm:$0xff]   ;;  %v79_v9 = vpack.c.bf16 %v78_v5, %v78_v5 }
  0x4d   :  { %121 = vmatpush1.bf16.msra.mxu0 %v718_v2  ;;  %v722_v6 = vld [vmem:[#allocation7 + $0x4] ss:$8 sps:$4 sm:$0xff]   ;;  %v724_v7 = vld [vmem:[#allocation7] ss:$8 sps:$4 sm:$0xff]   ;;  %v725_v8 = vld [vmem:[#allocation7 + $0x14] ss:$8 sps:$4 sm:$0xff]  }
  0x4e   :  { %122 = vmatprep.subr.bf16.mxu0 %v719_v3  ;;  %370 = vmatprep.subr.bf16.mxu1 %v722_v6  ;;  %v727_v10 = vld [vmem:[#allocation7 + $0x10] ss:$8 sps:$4 sm:$0xff]   ;;  %vm116_vm0 = vcmask 261120   ;;  %v728_v11 = vld [vmem:[#allocation7 + $0x24] ss:$8 sps:$4 sm:$0xff]   ;;  %v87_v48 = vshrl.u32 %v86_v47, 7 }
  0x4f   :  { %371 = vmatpush1.bf16.msra.mxu1 %v724_v7  ;;  %v730_v12 = vld [vmem:[#allocation7 + $0x20] ss:$8 sps:$4 sm:$0xff]   ;;  %v731_v13 = vld [vmem:[#allocation7 + $0x34] ss:$8 sps:$4 sm:$0xff]   ;;  %v733_v14 = vld [vmem:[#allocation7 + $0x30] ss:$8 sps:$4 sm:$0xff]  }
  0x50   :  { %372 = vmatprep.subr.bf16.mxu1 %v725_v8  ;;  %v734_v15 = vld [vmem:[#allocation7 + $0x44] ss:$8 sps:$4 sm:$0xff]   ;;  %v736_v16 = vld [vmem:[#allocation7 + $0x40] ss:$8 sps:$4 sm:$0xff]   ;;  %v737_v17 = vld [vmem:[#allocation7 + $0x54] ss:$8 sps:$4 sm:$0xff]  }
  0x51   :  { %123 = vmatpush1.bf16.msra.mxu0 %v721_v4  ;;  %v739_v18 = vld [vmem:[#allocation7 + $0x50] ss:$8 sps:$4 sm:$0xff]   ;;  %v740_v19 = vld [vmem:[#allocation7 + $0x64] ss:$8 sps:$4 sm:$0xff]   ;;  %v742_v20 = vld [vmem:[#allocation7 + $0x60] ss:$8 sps:$4 sm:$0xff]  }
  0x52   :  { %v743_v21 = vld [vmem:[#allocation7 + $0x74] ss:$8 sps:$4 sm:$0xff]   ;;  %v745_v22 = vld [vmem:[#allocation7 + $0x70] ss:$8 sps:$4 sm:$0xff]   ;;  %v746_v23 = vld [vmem:[#allocation7 + $0x84] ss:$8 sps:$4 sm:$0xff]  }
  0x53   :  { %373 = vmatpush1.bf16.msra.mxu1 %v727_v10  ;;  %v748_v24 = vld [vmem:[#allocation7 + $0x80] ss:$8 sps:$4 sm:$0xff]   ;;  %v749_v25 = vld [vmem:[#allocation7 + $0x94] ss:$8 sps:$4 sm:$0xff]   ;;  %v751_v26 = vld [vmem:[#allocation7 + $0x90] ss:$8 sps:$4 sm:$0xff]  }
  0x54   :  { %632 = vmatmul.mubr.msk.bf16.vlgmr.msra.gmra.mrb[0].mxu0 %vm116_vm0, %v79_v9  ;;  %374 = vmatprep.subr.bf16.mxu1 %v728_v11  ;;  %v752_v27 = vld [vmem:[#allocation7 + $0xa4] ss:$8 sps:$4 sm:$0xff]   ;;  %v754_v28 = vld [vmem:[#allocation7 + $0xa0] ss:$8 sps:$4 sm:$0xff]   ;;  %v755_v29 = vld [vmem:[#allocation7 + $0xb4] ss:$8 sps:$4 sm:$0xff]  }
  0x55   :  { %v757_v30 = vld [vmem:[#allocation7 + $0xb0] ss:$8 sps:$4 sm:$0xff]   ;;  %v758_v31 = vld [vmem:[#allocation7 + $0xc4] ss:$8 sps:$4 sm:$0xff]   ;;  %v760_v32 = vld [vmem:[#allocation7 + $0xc0] ss:$8 sps:$4 sm:$0xff]  }
  0x56   :  { %v761_v33 = vld [vmem:[#allocation7 + $0xd4] ss:$8 sps:$4 sm:$0xff]   ;;  %v763_v34 = vld [vmem:[#allocation7 + $0xd0] ss:$8 sps:$4 sm:$0xff]   ;;  %v764_v35 = vld [vmem:[#allocation7 + $0xe4] ss:$8 sps:$4 sm:$0xff]  }
  0x57   :  { %375 = vmatpush1.bf16.msra.mxu1 %v730_v12  ;;  %v766_v36 = vld [vmem:[#allocation7 + $0xe0] ss:$8 sps:$4 sm:$0xff]   ;;  %v767_v37 = vld [vmem:[#allocation7 + $0xf4] ss:$8 sps:$4 sm:$0xff]   ;;  %v769_v38 = vld [vmem:[#allocation7 + $0xf0] ss:$8 sps:$4 sm:$0xff]  }
  0x58   :  { %376 = vmatprep.subr.bf16.mxu1 %v731_v13  ;;  %v770_v39 = vld [vmem:[#allocation8 + $0x40] sm:$0xff]   ;;  %v772_v41 = vld [vmem:[#allocation8 + $0x48] sm:$0xff]   ;;  %v774_v43 = vld [vmem:[#allocation8 + $0x50] sm:$0xff]   ;;  %v88_v49 = vsub.s32 0, %v87_v48  ;;  %v92_v51 = vsub.s32 1, %v87_v48  ;;  %s947_s26 = smov [#allocation11]  }
  0x59   :  { %v771_v40 = vld [vmem:[#allocation8] sm:$0xff]   ;;  %683 = vmatprep.subr.bf16.mxu0 %v770_v39  ;;  %v773_v42 = vld [vmem:[#allocation8 + $0x8] sm:$0xff]   ;;  %v775_v44 = vld [vmem:[#allocation8 + $0x10] sm:$0xff]   ;;  %s613_s27 = sshll.u32 %s947_s26, 4  ;;  %s614_s27 = int_to_ptr.vmem [resolvable:$true] %s613_s27 }
  0x5a   :  { %684 = vmatpush3.bf16.msra.mxu0 %v771_v40  ;;  %v776_v45 = vld [vmem:[#allocation8 + $0x58] sm:$0xff]   ;;  %v778_v0 = vld [vmem:[#allocation8 + $0x60] sm:$0xff]   ;;  %v780_v2 = vld [vmem:[#allocation8 + $0x68] sm:$0xff]   ;;  %s884_s28 = scalar_lea.vmem %s614_s27, 128  ;;  %p889_p5 = scmp.lt.s32.totalorder %s614_s27, %s614_s27 }
  0x5b   :  { %377 = vmatpush1.bf16.msra.mxu1 %v733_v14  ;;  %685 = vmatprep.subr.bf16.mxu0 %v772_v41  ;;  %v777_v46 = vld [vmem:[#allocation8 + $0x18] sm:$0xff]   ;;  %v779_v1 = vld [vmem:[#allocation8 + $0x20] sm:$0xff]   ;;  %v781_v3 = vld [vmem:[#allocation8 + $0x28] sm:$0xff]   ;;  %p885_p4 = scmp.ne.s32.totalorder %s614_s27, %s884_s28  ;;  %p890_p6 = scmp.lt.s32.totalorder %s884_s28, %s884_s28 }
  0x5c   :  { %378 = vmatprep.subr.bf16.mxu1 %v734_v15  ;;  %v84_v50 = vld [vmem:[%s1078_s4] ss:$4 sm:$0x3]  ;;  %v782_v4 = vld [vmem:[#allocation8 + $0x70] sm:$0xff]  }
  0x5d   :  { %v89_v52 = vrot.slane %v84_v50, %v88_v49  ;;  %v93_v53 = vrot.slane %v84_v50, %v92_v51  ;;  %v783_v5 = vld [vmem:[#allocation8 + $0x30] sm:$0xff]   ;;  %v784_v6 = vld [vmem:[#allocation8 + $0x78] sm:$0xff]   ;;  %p891_p7 = por %p890_p6, %p889_p5 }
  0x5e   :  { %686 = vmatpush3.bf16.msra.mxu0 %v773_v42  ;;  %v785_v7 = vld [vmem:[#allocation8 + $0x38] sm:$0xff]  }
  0x5f   :  { %379 = vmatpush1.bf16.msra.mxu1 %v736_v16  ;;  %687 = vmatprep.subr.bf16.mxu0 %v774_v43  ;;  %v633_v8 = vld [vmem:[%s1078_s4 + $0x1] ss:$4 sm:$0x3]  ;;  %p892_p8 = pnand %p891_p7, %p885_p4 }
  0x60   :  { %380 = vmatprep.subr.bf16.mxu1 %v737_v17  ;;  %v203_v9 = vrot.slane %v633_v8, %v88_v49  ;;  %v207_v10 = vrot.slane %v633_v8, %v92_v51 }
  0x62   :  { %688 = vmatpush3.bf16.msra.mxu0 %v775_v44 }
  0x63   :  { %381 = vmatpush1.bf16.msra.mxu1 %v739_v18  ;;  %689 = vmatprep.subr.bf16.mxu0 %v776_v45 }
  0x64   :  { %382 = vmatprep.subr.bf16.mxu1 %v740_v19 }
  0x66   :  { %690 = vmatpush3.bf16.msra.mxu0 %v777_v46 }
  0x67   :  { %383 = vmatpush1.bf16.msra.mxu1 %v742_v20  ;;  %691 = vmatprep.subr.bf16.mxu0 %v778_v0 }
  0x68   :  { %384 = vmatprep.subr.bf16.mxu1 %v743_v21  ;;  %v589_v21 = vld [vmem:[%s1078_s4 + $0x3] sm:$0x1] }
  0x6a   :  { %692 = vmatpush3.bf16.msra.mxu0 %v779_v1 }
  0x6b   :  { %385 = vmatpush1.bf16.msra.mxu1 %v745_v22  ;;  %693 = vmatprep.subr.bf16.mxu0 %v780_v2  ;;  %v590_v22 = vmul.f32 1.442695, %v589_v21 }
  0x6c   :  { %386 = vmatprep.subr.bf16.mxu1 %v746_v23 }
  0x6e   :  { %694 = vmatpush3.bf16.msra.mxu0 %v781_v3 }
  0x6f   :  { %387 = vmatpush1.bf16.msra.mxu1 %v748_v24  ;;  %695 = vmatprep.subr.bf16.mxu0 %v782_v4 }
  0x70   :  { %388 = vmatprep.subr.bf16.mxu1 %v749_v25 }
  0x72   :  { %696 = vmatpush3.bf16.msra.mxu0 %v783_v5 }
  0x73   :  { %389 = vmatpush1.bf16.msra.mxu1 %v751_v26  ;;  %697 = vmatprep.subr.bf16.mxu0 %v784_v6 }
  0x74   :  { %390 = vmatprep.subr.bf16.mxu1 %v752_v27 }
  0x76   :  { %698 = vmatpush3.bf16.msra.mxu0 %v785_v7 }
  0x77   :  { %391 = vmatpush1.bf16.msra.mxu1 %v754_v28 }
  0x78   :  { %392 = vmatprep.subr.bf16.mxu1 %v755_v29 }
  0x7b   :  { %393 = vmatpush1.bf16.msra.mxu1 %v757_v30 }
  0x7c   :  { %394 = vmatprep.subr.bf16.mxu1 %v758_v31 }
  0x7f   :  { %395 = vmatpush1.bf16.msra.mxu1 %v760_v32 }
  0x80   :  { %396 = vmatprep.subr.bf16.mxu1 %v761_v33 }
  0x83   :  { %397 = vmatpush1.bf16.msra.mxu1 %v763_v34 }
  0x84   :  { %398 = vmatprep.subr.bf16.mxu1 %v764_v35 }
  0x87   :  { %399 = vmatpush1.bf16.msra.mxu1 %v766_v36 }
  0x88   :  { %400 = vmatprep.subr.bf16.mxu1 %v767_v37 }
  0x8b   :  { %401 = vmatpush1.bf16.msra.mxu1 %v769_v38 }
 0x127   :  { %v154_v54 = vpop.f32.mrb[0].mxu0 }
 0x128   :  { %v155_v55 = vadd.f32 %v154_v54, %v89_v52  ;;  %v156_v56 = vpop.f32.mrb[1].mxu0 }
 0x129   :  { %v157_v57 = vadd.f32 %v156_v56, %v93_v53  ;;  %v158_v58 = vpop.f32.mrb[2].mxu0 }
 0x12a   :  { %786 = vtanh.f32 %v155_v55  ;;  %v159_v59 = vpop.f32.mrb[3].mxu0 }
 0x12b   :  { %788 = vtanh.f32 %v157_v57 }
 0x134   :  { %v787_v60 = vpop.eup %786 }
 0x135   :  { %v789_v61 = vpop.eup %788  ;;  %v163_v63 = vpack.c.bf16 %v787_v60, %v787_v60 }
 0x136   :  { %v164_v62 = vpack.c.bf16 %v789_v61, %v789_v61 }
 0x138   :  { %402 = vmatprep.mubr.bf16.mxu1 %v164_v62 }
 0x139   :  { %403 = vmatmul.mubr.bf16.vlgmr.msra.gmra.mrb[0].mxu1 %v163_v63 }
 0x20c   :  { %v404_v11 = vpop.f32.mrb[0].mxu1 }
 0x20d   :  { %v405_v12 = vadd.f32 %v404_v11, %v203_v9  ;;  %v406_v13 = vpop.f32.mrb[1].mxu1 }
 0x20e   :  { %v407_v14 = vadd.f32 %v406_v13, %v207_v10  ;;  %v408_v15 = vpop.f32.mrb[2].mxu1 }
 0x20f   :  { %790 = vtanh.f32 %v405_v12  ;;  %v409_v16 = vpop.f32.mrb[3].mxu1 }
 0x210   :  { %792 = vtanh.f32 %v407_v14 }
 0x211   :  { %794 = vpow2.f32 %v590_v22 }
 0x219   :  { %v791_v17 = vpop.eup %790 }
 0x21a   :  { %v793_v18 = vpop.eup %792  ;;  %v413_v20 = vpack.c.bf16 %v791_v17, %v791_v17 }
 0x21b   :  { %v414_v19 = vpack.c.bf16 %v793_v18, %v793_v18  ;;  %v795_v23 = vpop.eup %794 }
 0x21c   :  { %v595_v24 = vrot.slane %v795_v23, %v88_v49 }
 0x21d   :  { %580 = vmatprep.mubr.bf16.mxu0 %v414_v19 }
 0x21e   :  { %581 = vmatmul.mubr.bf16.vlgmr.msra.gmra.mrb[4].mxu0 %v413_v20  ;;  %596 = vst [vmem:[#allocation11] sm:$0xff] %v595_v24 }
 0x21f   :  { %895 = shalt.err (!%p892_p8)
}
 0x220   :  { %s896_s9 = scalar_lea.hbm %s1080_s6, 128 }
 0x221   :  { %p897_p9 = scmp.ne.s32.totalorder %s1080_s6, %s896_s9  ;;  %p900_p10 = scmp.lt.u32.totalorder %s896_s9, %s1080_s6 }
 0x223   :  { %p902_p11 = pnand %p900_p10, %p897_p9 }
 0x225   :  { %905 = shalt.err (!%p902_p11)
}
 0x226   :  { %616 = dma.vmem_to_hbm [thread:$0]  %s614_s27, 128, %s1080_s6, [#allocation12]   ;;  %v666_v26 = vld [vmem:[%s1078_s4 + $0x2] ss:$0 sm:$0xff] }
 0x227   :  { %s948_s18 = smov [#allocation10]  }
 0x228   :  { %s603_s19 = sshll.u32 %s948_s18, 4  ;;  %s604_s19 = int_to_ptr.vmem [resolvable:$true] %s603_s19 }
 0x229   :  { %s906_s20 = scalar_lea.vmem %s604_s19, 128  ;;  %p911_p13 = scmp.lt.s32.totalorder %s604_s19, %s604_s19 }
 0x22a   :  { %p907_p12 = scmp.ne.s32.totalorder %s604_s19, %s906_s20  ;;  %p912_p0 = scmp.lt.s32.totalorder %s906_s20, %s906_s20 }
 0x22c   :  { %p913_p1 = por %p912_p0, %p911_p13 }
 0x22e   :  { %p914_p2 = pnand %p913_p1, %p907_p12 }
 0x2f1   :  { %v699_v25 = vpop.f32.mrb[4].mxu0 }
 0x2f2   :  { %v700_v27 = vpop.f32.mrb[5].mxu0 }
 0x2f3   :  { %v701_v28 = vadd.f32 %v700_v27, %v699_v25  ;;  %v702_v29 = vpop.f32.mrb[6].mxu0 }
 0x2f4   :  { %v703_v30 = vpop.f32.mrb[7].mxu0 }
 0x2f5   :  { %v583_v31 = vadd.f32 %v701_v28, %v666_v26 }
 0x2f7   :  { %588 = vst [vmem:[#allocation10] sm:$0xff] %v583_v31 }
 0x2f8   :  { %917 = shalt.err (!%p914_p2)
}
 0x2f9   :  { %s918_s4 = scalar_lea.hbm %s1079_s5, 128 }
 0x2fa   :  { %p919_p3 = scmp.ne.s32.totalorder %s1079_s5, %s918_s4  ;;  %p922_p4 = scmp.lt.u32.totalorder %s918_s4, %s1079_s5 }
 0x2fc   :  { %p924_p5 = pnand %p922_p4, %p919_p3 }
 0x2fe   :  { %927 = shalt.err (!%p924_p5)
}
 0x2ff   :  { %606 = dma.vmem_to_hbm [thread:$0]  %s604_s19, 128, %s1079_s5, [#allocation4]  }
 0x300   :  { %934 = dma.done.wait [#allocation4], 128  }
 0x301   :  { %935 = vsyncadd [#allocation4], 4294967168 }
 0x302   :  { %936 = dma.done.wait [#allocation12], 128  }
 0x303   :  { %937 = vsyncadd [#allocation12], 4294967168 }
 0x304   :  { %623 = vsyncpa [#allocation3], 1 }
 0x305   :  { %624 = vsyncpa [#allocation6], 1 }
 0x306   :  { %625 = vsyncpa [#allocation9], 1 }
 0x307   :  { %626 = vsyncpa [#allocation4], 1 }
 0x308   :  { %627 = vsyncpa [#allocation12], 1 }

</bundles_post_ra>
